<compile_context>
chip_gen: v7x
topology: tpu7x:2x2x1
jax: 0.10.0
libtpu: 0.0.40
codegen_flags: <defaults>
</compile_context>

<pallas_src>
import functools

import jax
import jax.numpy as jnp
from jax.experimental import pallas as pl
from jax.experimental.pallas import tpu as pltpu

LANE = 128  # TPU lane width; all feature dims are padded to this.


def _round_up(x, m):
    return ((x + m - 1) // m) * m


def _leaky_relu(h, slope=0.01):
    return jnp.where(h > 0, h, slope * h)


# ---------------------------------------------------------------------------
# Kernel: whole MLP fused, one batch tile per grid step.
# ---------------------------------------------------------------------------
def dqn_kernel(x_ref,
               w1_ref, b1_ref,
               w2_ref, b2_ref,
               w3_ref, b3_ref,
               w4_ref, b4_ref,
               o_ref):
    """x_ref : (TB, 128)  bf16   (state features zero-padded to 128 lanes)
       wN    : (128, 128) bf16   (zero-padded in/out dims)
       bN    : (1, 128)   f32    (zero-padded)
       o_ref : (TB, 128)  f32    (lane-dense; caller slices to action_size)
    """
    # Layer 1: Linear(state_size, 64) + LeakyReLU(0.01)
    h = jnp.dot(x_ref[...], w1_ref[...],
                preferred_element_type=jnp.float32) + b1_ref[...]
    h = _leaky_relu(h)

    # Layer 2: Linear(64, 64) + LeakyReLU(0.01)
    h = jnp.dot(h.astype(w2_ref.dtype), w2_ref[...],
                preferred_element_type=jnp.float32) + b2_ref[...]
    h = _leaky_relu(h)

    # Layer 3: Linear(64, 32) + LeakyReLU(0.01)
    h = jnp.dot(h.astype(w3_ref.dtype), w3_ref[...],
                preferred_element_type=jnp.float32) + b3_ref[...]
    h = _leaky_relu(h)

    # Layer 4: Linear(32, action_size)  (no activation)
    out = jnp.dot(h.astype(w4_ref.dtype), w4_ref[...],
                  preferred_element_type=jnp.float32) + b4_ref[...]

    o_ref[...] = out.astype(o_ref.dtype)


# ---------------------------------------------------------------------------
# Parameter preparation: pad to lane-aligned shapes, cast weights to bf16.
# Done once, outside the per-call path.
# ---------------------------------------------------------------------------
def prepare_params(params, compute_dtype=jnp.bfloat16):
    prepared = {}
    for i in range(1, 5):
        w = params[f"w{i}"]
        b = params[f"b{i}"]
        k_in, k_out = w.shape
        k_in_p = _round_up(k_in, LANE)
        k_out_p = _round_up(k_out, LANE)
        w_pad = jnp.zeros((k_in_p, k_out_p), compute_dtype)
        w_pad = w_pad.at[:k_in, :k_out].set(w.astype(compute_dtype))
        b_pad = jnp.zeros((1, k_out_p), jnp.float32)
        b_pad = b_pad.at[:, :k_out].set(b.astype(jnp.float32))
        prepared[f"w{i}"] = w_pad
        prepared[f"b{i}"] = b_pad
    return prepared


# ---------------------------------------------------------------------------
# Wrapper: grid over batch, weights resident via constant index_maps.
# ---------------------------------------------------------------------------
@functools.partial(jax.jit, static_argnames=("action_size", "block_b"))
def dqn_forward(x, prepared, action_size, block_b=256):
    """x        : (B, state_size) float32
       prepared : output of prepare_params (padded bf16 weights, f32 biases)
       returns  : (B, action_size) float32
    """
    B, S = x.shape
    in_dtype = prepared["w1"].dtype
    f_in = prepared["w1"].shape[0]    # padded state dim (128)
    f_out = prepared["w4"].shape[1]   # padded action dim (128) -> lane-dense out

    # Batch tile: multiple of 8 sublanes, capped by (padded) batch size.
    tb = min(block_b, _round_up(B, 8))
    b_pad = _round_up(B, tb)

    # Pad batch + features with zeros; padded rows/cols are sliced off below.
    x_pad = jnp.zeros((b_pad, f_in), in_dtype)
    x_pad = x_pad.at[:B, :S].set(x.astype(in_dtype))

    grid = (b_pad // tb,)

    # Explicit specs (no loop-variable closure capture).
    x_spec = pl.BlockSpec((tb, f_in), lambda i: (i, 0))
    out_spec = pl.BlockSpec((tb, f_out), lambda i: (i, 0))

    def resident(shape):
        # Constant index_map: block never changes -> stays VMEM-resident,
        # DMA'd once regardless of how many batch tiles run.
        return pl.BlockSpec(shape, lambda i: (0, 0))

    in_specs = [
        x_spec,
        resident(prepared["w1"].shape), resident(prepared["b1"].shape),
        resident(prepared["w2"].shape), resident(prepared["b2"].shape),
        resident(prepared["w3"].shape), resident(prepared["b3"].shape),
        resident(prepared["w4"].shape), resident(prepared["b4"].shape),
    ]

    # Advisory cost hint (real, unpadded problem size).
    flops = 2 * B * (S * 64 + 64 * 64 + 64 * 32 + 32 * action_size)
    weight_bytes = sum(int(prepared[f"w{i}"].size) * 2
                       + int(prepared[f"b{i}"].size) * 4 for i in range(1, 5))
    bytes_accessed = int(x_pad.size) * 2 + weight_bytes + b_pad * f_out * 4
    cost = pl.CostEstimate(flops=flops, transcendentals=0,
                           bytes_accessed=bytes_accessed)

    out_pad = pl.pallas_call(
        dqn_kernel,
        out_shape=jax.ShapeDtypeStruct((b_pad, f_out), jnp.float32),
        grid=grid,
        in_specs=in_specs,
        out_specs=out_spec,
        compiler_params=pltpu.CompilerParams(
            dimension_semantics=("parallel",)),   # shards batch tiles across TCs on v7x
        cost_estimate=cost,
    )(x_pad,
      prepared["w1"], prepared["b1"],
      prepared["w2"], prepared["b2"],
      prepared["w3"], prepared["b3"],
      prepared["w4"], prepared["b4"])

    return out_pad[:B, :action_size]


# ---------------------------------------------------------------------------
# Init + references
# ---------------------------------------------------------------------------
def init_dqn_params(key, state_size, action_size):
    """PyTorch nn.Linear-style uniform(-1/sqrt(fan_in), 1/sqrt(fan_in)).
    Weights stored as [in, out] (transpose of PyTorch's [out, in])."""
    sizes = [(state_size, 64), (64, 64), (64, 32), (32, action_size)]
    params = {}
    keys = jax.random.split(key, 2 * len(sizes))
    for i, (fan_in, fan_out) in enumerate(sizes):
        bound = 1.0 / jnp.sqrt(jnp.float32(fan_in))
        w = jax.random.uniform(keys[2 * i], (fan_in, fan_out),
                               minval=-bound, maxval=bound, dtype=jnp.float32)
        b = jax.random.uniform(keys[2 * i + 1], (1, fan_out),
                               minval=-bound, maxval=bound, dtype=jnp.float32)
        params[f"w{i + 1}"] = w
        params[f"b{i + 1}"] = b
    return params


def dqn_ref_f32(x, params):
    """Pure f32 reference (matches PyTorch module numerics)."""
    h = x
    for i in range(1, 4):
        h = h @ params[f"w{i}"] + params[f"b{i}"]
        h = jnp.where(h > 0, h, 0.01 * h)
    return h @ params["w4"] + params["b4"]


def dqn_ref_bf16(x, params):
    """Reference matching kernel numerics: bf16 matmul operands, f32
    accumulation / bias / LeakyReLU."""
    h = x
    for i in range(1, 5):
        w = params[f"w{i}"].astype(jnp.bfloat16)
        h = jnp.dot(h.astype(jnp.bfloat16), w,
                    preferred_element_type=jnp.float32) + params[f"b{i}"]
        if i < 4:
            h = jnp.where(h > 0, h, 0.01 * h)
    return h


if __name__ == "__main__":
    state_size = 16
    action_size = 4
    batch = 8

    key = jax.random.PRNGKey(0)
    k_params, k_x = jax.random.split(key)

    params = init_dqn_params(k_params, state_size, action_size)
    prepared = prepare_params(params)
    x = jax.random.normal(k_x, (batch, state_size), dtype=jnp.float32)

    out = dqn_forward(x, prepared, action_size)
    out = jax.block_until_ready(out)

    assert out.shape == (batch, action_size), out.shape

    # Tight check vs a reference with identical (bf16-operand) numerics.
    ref_bf16 = dqn_ref_bf16(x, params)
    assert jnp.allclose(out, ref_bf16, atol=2e-3, rtol=2e-3), \
        "mismatch vs bf16-matched reference"

    # Loose check vs the pure-f32 PyTorch-equivalent reference.
    ref_f32 = dqn_ref_f32(x, params)
    assert jnp.allclose(out, ref_f32, atol=1e-1, rtol=1e-1), \
        "mismatch vs f32 reference"

    print("KERNEL_OK")
</pallas_src>

<mosaic_0001>
module attributes {stable_mosaic.version = 11 : i64} {
  func.func @dqn_kernel(%arg0: i32, %arg1: memref<8x128xbf16, #tpu.memory_space<vmem>>, %arg2: memref<128x128xbf16, #tpu.memory_space<vmem>>, %arg3: memref<1x128xf32, #tpu.memory_space<vmem>>, %arg4: memref<128x128xbf16, #tpu.memory_space<vmem>>, %arg5: memref<1x128xf32, #tpu.memory_space<vmem>>, %arg6: memref<128x128xbf16, #tpu.memory_space<vmem>>, %arg7: memref<1x128xf32, #tpu.memory_space<vmem>>, %arg8: memref<128x128xbf16, #tpu.memory_space<vmem>>, %arg9: memref<1x128xf32, #tpu.memory_space<vmem>>, %arg10: memref<8x128xf32, #tpu.memory_space<vmem>>) attributes {dimension_semantics = [#tpu.dimension_semantics<parallel>], iteration_bounds = array<i64: 1>, scalar_prefetch = 0 : i64, scratch_operands = 0 : i64, tpu.core_type = #tpu.core_type<tc>, window_params = [{transform_indices = @transform_0, window_bounds = array<i64: 8, 128>}, {pipeline_mode = #tpu.pipeline_mode<synchronous>, transform_indices = @transform_1, window_bounds = array<i64: 128, 128>}, {pipeline_mode = #tpu.pipeline_mode<synchronous>, transform_indices = @transform_2, window_bounds = array<i64: 1, 128>}, {pipeline_mode = #tpu.pipeline_mode<synchronous>, transform_indices = @transform_3, window_bounds = array<i64: 128, 128>}, {pipeline_mode = #tpu.pipeline_mode<synchronous>, transform_indices = @transform_4, window_bounds = array<i64: 1, 128>}, {pipeline_mode = #tpu.pipeline_mode<synchronous>, transform_indices = @transform_5, window_bounds = array<i64: 128, 128>}, {pipeline_mode = #tpu.pipeline_mode<synchronous>, transform_indices = @transform_6, window_bounds = array<i64: 1, 128>}, {pipeline_mode = #tpu.pipeline_mode<synchronous>, transform_indices = @transform_7, window_bounds = array<i64: 128, 128>}, {pipeline_mode = #tpu.pipeline_mode<synchronous>, transform_indices = @transform_8, window_bounds = array<i64: 1, 128>}, {transform_indices = @transform_9, window_bounds = array<i64: 8, 128>}]} {
    %c0 = arith.constant 0 : index
    %c0_0 = arith.constant 0 : index
    %0 = vector.load %arg1[%c0, %c0_0] : memref<8x128xbf16, #tpu.memory_space<vmem>>, vector<8x128xbf16>
    %c0_1 = arith.constant 0 : index
    %c0_2 = arith.constant 0 : index
    %1 = vector.load %arg2[%c0_1, %c0_2] : memref<128x128xbf16, #tpu.memory_space<vmem>>, vector<128x128xbf16>
    %cst = arith.constant dense<0.000000e+00> : vector<8x128xf32>
    %2 = tpu.matmul %0, %1, %cst {dimension_numbers = #tpu.dot_dimension_numbers<[1], [0], [0], [1], [0, 0, 1, 1], [], []>} : vector<8x128xbf16>, vector<128x128xbf16>, vector<8x128xf32> -> vector<8x128xf32>
    %c0_3 = arith.constant 0 : index
    %c0_4 = arith.constant 0 : index
    %3 = vector.load %arg3[%c0_3, %c0_4] : memref<1x128xf32, #tpu.memory_space<vmem>>, vector<1x128xf32>
    %4 = vector.broadcast %3 : vector<1x128xf32> to vector<8x128xf32>
    %5 = arith.addf %2, %4 : vector<8x128xf32>
    %cst_5 = arith.constant 0.000000e+00 : f32
    %6 = vector.broadcast %cst_5 : f32 to vector<8x128xf32>
    %7 = arith.cmpf ogt, %5, %6 : vector<8x128xf32>
    %cst_6 = arith.constant 0.00999999977 : f32
    %8 = vector.broadcast %cst_6 : f32 to vector<8x128xf32>
    %9 = arith.mulf %8, %5 : vector<8x128xf32>
    %10 = arith.select %7, %5, %9 : vector<8x128xi1>, vector<8x128xf32>
    %11 = arith.truncf %10 : vector<8x128xf32> to vector<8x128xbf16>
    %c0_7 = arith.constant 0 : index
    %c0_8 = arith.constant 0 : index
    %12 = vector.load %arg4[%c0_7, %c0_8] : memref<128x128xbf16, #tpu.memory_space<vmem>>, vector<128x128xbf16>
    %cst_9 = arith.constant dense<0.000000e+00> : vector<8x128xf32>
    %13 = tpu.matmul %11, %12, %cst_9 {dimension_numbers = #tpu.dot_dimension_numbers<[1], [0], [0], [1], [0, 0, 1, 1], [], []>} : vector<8x128xbf16>, vector<128x128xbf16>, vector<8x128xf32> -> vector<8x128xf32>
    %c0_10 = arith.constant 0 : index
    %c0_11 = arith.constant 0 : index
    %14 = vector.load %arg5[%c0_10, %c0_11] : memref<1x128xf32, #tpu.memory_space<vmem>>, vector<1x128xf32>
    %15 = vector.broadcast %14 : vector<1x128xf32> to vector<8x128xf32>
    %16 = arith.addf %13, %15 : vector<8x128xf32>
    %cst_12 = arith.constant 0.000000e+00 : f32
    %17 = vector.broadcast %cst_12 : f32 to vector<8x128xf32>
    %18 = arith.cmpf ogt, %16, %17 : vector<8x128xf32>
    %cst_13 = arith.constant 0.00999999977 : f32
    %19 = vector.broadcast %cst_13 : f32 to vector<8x128xf32>
    %20 = arith.mulf %19, %16 : vector<8x128xf32>
    %21 = arith.select %18, %16, %20 : vector<8x128xi1>, vector<8x128xf32>
    %22 = arith.truncf %21 : vector<8x128xf32> to vector<8x128xbf16>
    %c0_14 = arith.constant 0 : index
    %c0_15 = arith.constant 0 : index
    %23 = vector.load %arg6[%c0_14, %c0_15] : memref<128x128xbf16, #tpu.memory_space<vmem>>, vector<128x128xbf16>
    %cst_16 = arith.constant dense<0.000000e+00> : vector<8x128xf32>
    %24 = tpu.matmul %22, %23, %cst_16 {dimension_numbers = #tpu.dot_dimension_numbers<[1], [0], [0], [1], [0, 0, 1, 1], [], []>} : vector<8x128xbf16>, vector<128x128xbf16>, vector<8x128xf32> -> vector<8x128xf32>
    %c0_17 = arith.constant 0 : index
    %c0_18 = arith.constant 0 : index
    %25 = vector.load %arg7[%c0_17, %c0_18] : memref<1x128xf32, #tpu.memory_space<vmem>>, vector<1x128xf32>
    %26 = vector.broadcast %25 : vector<1x128xf32> to vector<8x128xf32>
    %27 = arith.addf %24, %26 : vector<8x128xf32>
    %cst_19 = arith.constant 0.000000e+00 : f32
    %28 = vector.broadcast %cst_19 : f32 to vector<8x128xf32>
    %29 = arith.cmpf ogt, %27, %28 : vector<8x128xf32>
    %cst_20 = arith.constant 0.00999999977 : f32
    %30 = vector.broadcast %cst_20 : f32 to vector<8x128xf32>
    %31 = arith.mulf %30, %27 : vector<8x128xf32>
    %32 = arith.select %29, %27, %31 : vector<8x128xi1>, vector<8x128xf32>
    %33 = arith.truncf %32 : vector<8x128xf32> to vector<8x128xbf16>
    %c0_21 = arith.constant 0 : index
    %c0_22 = arith.constant 0 : index
    %34 = vector.load %arg8[%c0_21, %c0_22] : memref<128x128xbf16, #tpu.memory_space<vmem>>, vector<128x128xbf16>
    %cst_23 = arith.constant dense<0.000000e+00> : vector<8x128xf32>
    %35 = tpu.matmul %33, %34, %cst_23 {dimension_numbers = #tpu.dot_dimension_numbers<[1], [0], [0], [1], [0, 0, 1, 1], [], []>} : vector<8x128xbf16>, vector<128x128xbf16>, vector<8x128xf32> -> vector<8x128xf32>
    %c0_24 = arith.constant 0 : index
    %c0_25 = arith.constant 0 : index
    %36 = vector.load %arg9[%c0_24, %c0_25] : memref<1x128xf32, #tpu.memory_space<vmem>>, vector<1x128xf32>
    %37 = vector.broadcast %36 : vector<1x128xf32> to vector<8x128xf32>
    %38 = arith.addf %35, %37 : vector<8x128xf32>
    %c0_26 = arith.constant 0 : index
    %c0_27 = arith.constant 0 : index
    %39 = vector.load %arg10[%c0_26, %c0_27] : memref<8x128xf32, #tpu.memory_space<vmem>>, vector<8x128xf32>
    tpu.vector_store %arg10[%c0_26, %c0_27], %38 {strides = array<i32>} : memref<8x128xf32, #tpu.memory_space<vmem>>, vector<8x128xf32>,
    return
  }
  func.func @transform_0(%arg0: i32) -> (i32, i32) {
    %c0_i32 = arith.constant 0 : i32
    %c0_i32_0 = arith.constant 0 : i32
    return %arg0, %c0_i32 : i32, i32
  }
  func.func @transform_1(%arg0: i32) -> (i32, i32) {
    %c0_i32 = arith.constant 0 : i32
    %c0_i32_0 = arith.constant 0 : i32
    %c0_i32_1 = arith.constant 0 : i32
    return %c0_i32, %c0_i32_0 : i32, i32
  }
  func.func @transform_2(%arg0: i32) -> (i32, i32) {
    %c0_i32 = arith.constant 0 : i32
    %c0_i32_0 = arith.constant 0 : i32
    %c0_i32_1 = arith.constant 0 : i32
    return %c0_i32, %c0_i32_0 : i32, i32
  }
  func.func @transform_3(%arg0: i32) -> (i32, i32) {
    %c0_i32 = arith.constant 0 : i32
    %c0_i32_0 = arith.constant 0 : i32
    %c0_i32_1 = arith.constant 0 : i32
    return %c0_i32, %c0_i32_0 : i32, i32
  }
  func.func @transform_4(%arg0: i32) -> (i32, i32) {
    %c0_i32 = arith.constant 0 : i32
    %c0_i32_0 = arith.constant 0 : i32
    %c0_i32_1 = arith.constant 0 : i32
    return %c0_i32, %c0_i32_0 : i32, i32
  }
  func.func @transform_5(%arg0: i32) -> (i32, i32) {
    %c0_i32 = arith.constant 0 : i32
    %c0_i32_0 = arith.constant 0 : i32
    %c0_i32_1 = arith.constant 0 : i32
    return %c0_i32, %c0_i32_0 : i32, i32
  }
  func.func @transform_6(%arg0: i32) -> (i32, i32) {
    %c0_i32 = arith.constant 0 : i32
    %c0_i32_0 = arith.constant 0 : i32
    %c0_i32_1 = arith.constant 0 : i32
    return %c0_i32, %c0_i32_0 : i32, i32
  }
  func.func @transform_7(%arg0: i32) -> (i32, i32) {
    %c0_i32 = arith.constant 0 : i32
    %c0_i32_0 = arith.constant 0 : i32
    %c0_i32_1 = arith.constant 0 : i32
    return %c0_i32, %c0_i32_0 : i32, i32
  }
  func.func @transform_8(%arg0: i32) -> (i32, i32) {
    %c0_i32 = arith.constant 0 : i32
    %c0_i32_0 = arith.constant 0 : i32
    %c0_i32_1 = arith.constant 0 : i32
    return %c0_i32, %c0_i32_0 : i32, i32
  }
  func.func @transform_9(%arg0: i32) -> (i32, i32) {
    %c0_i32 = arith.constant 0 : i32
    %c0_i32_0 = arith.constant 0 : i32
    return %arg0, %c0_i32 : i32, i32
  }
}

</mosaic_0001>

<bundles_post_ra>
// kernel: dqn_forward.1
= control target key start
LH: loop header
LB: loop body
LE: loop exit
PB: predicated region body
PF: predicated region fallthrough
CT: control target
= control target key end

     0   :  { %14 = vsyncpa [#allocation3], 0  ;;  %s1029_s0 = inlined_call_operand.vmem [shape: bf16[8,128], index: 0, kind: input, shape index: {}]   ;;  %s1030_s1 = inlined_call_operand.hbm [shape: bf16[128,128], index: 1, kind: input, shape index: {}]   ;;  %s1031_s2 = inlined_call_operand.vmem [shape: f32[1,128], index: 2, kind: input, shape index: {}]   ;;  %s1032_s3 = inlined_call_operand.hbm [shape: bf16[128,128], index: 3, kind: input, shape index: {}]   ;;  %s1033_s4 = inlined_call_operand.vmem [shape: f32[1,128], index: 4, kind: input, shape index: {}]   ;;  %s1034_s5 = inlined_call_operand.hbm [shape: bf16[128,128], index: 5, kind: input, shape index: {}]   ;;  %s1035_s6 = inlined_call_operand.vmem [shape: f32[1,128], index: 6, kind: input, shape index: {}]   ;;  %s1036_s7 = inlined_call_operand.hbm [shape: bf16[128,128], index: 7, kind: input, shape index: {}]   ;;  %s1037_s8 = inlined_call_operand.vmem [shape: f32[1,128], index: 8, kind: input, shape index: {}]   ;;  %s1038_s9 = inlined_call_operand.vmem [shape: f32[8,128], index: 9, kind: output, shape index: {}]  }
   0x1   :  { %15 = vsyncpa [#allocation5], 0 }
   0x2   :  { %16 = vsyncpa [#allocation8], 0  ;;  %s839_s30 = smov [#allocation4]   ;;  %s840_s11 = smov [#allocation2]  }
   0x3   :  { %s38_s10 = sshll.u32 %s839_s30, 4  ;;  %s24_s12 = sshll.u32 %s840_s11, 4  ;;  %s39_s10 = int_to_ptr.vmem [resolvable:$true] %s38_s10  ;;  %s897_s12 = int_to_ptr.vmem [resolvable:$true] %s24_s12 }
   0x4   :  { %s745_s15 = scalar_lea.hbm %s1032_s3, 1024 }
   0x5   :  { %p746_p0 = scmp.ne.s32.totalorder %s1032_s3, %s745_s15  ;;  %p749_p1 = scmp.lt.u32.totalorder %s745_s15, %s1032_s3 }
   0x7   :  { %p751_p2 = pnand %p749_p1, %p746_p0 }
   0x9   :  { %754 = shalt.err (!%p751_p2)
}
   0xa   :  { %s755_s20 = scalar_lea.vmem %s39_s10, 1024  ;;  %p760_p4 = scmp.lt.s32.totalorder %s39_s10, %s39_s10 }
   0xb   :  { %p756_p3 = scmp.ne.s32.totalorder %s39_s10, %s755_s20  ;;  %p761_p5 = scmp.lt.s32.totalorder %s755_s20, %s755_s20 }
   0xd   :  { %p762_p6 = por %p761_p5, %p760_p4 }
   0xf   :  { %p763_p7 = pnand %p762_p6, %p756_p3 }
  0x11   :  { %766 = shalt.err (!%p763_p7)
}
  0x12   :  { %s841_s21 = smov 64   ;;  %s842_s22 = smov 4  }
  0x13   :  { %44 = dma.hbm_to_vmem [thread:$0]  %s1032_s3, 1024, %s39_s10, [#allocation5], %s841_s21, %s841_s21, %s842_s22  }
  0x14   :  { %s767_s27 = scalar_lea.hbm %s1030_s1, 1024 }
  0x15   :  { %p768_p8 = scmp.ne.s32.totalorder %s1030_s1, %s767_s27  ;;  %p771_p9 = scmp.lt.u32.totalorder %s767_s27, %s1030_s1 }
  0x17   :  { %p773_p10 = pnand %p771_p9, %p768_p8 }
  0x19   :  { %776 = shalt.err (!%p773_p10)
}
  0x1a   :  { %s777_s13 = scalar_lea.vmem %s897_s12, 1024  ;;  %p782_p12 = scmp.lt.s32.totalorder %s897_s12, %s897_s12 }
  0x1b   :  { %p778_p11 = scmp.ne.s32.totalorder %s897_s12, %s777_s13  ;;  %p783_p13 = scmp.lt.s32.totalorder %s777_s13, %s777_s13 }
  0x1d   :  { %p784_p0 = por %p783_p13, %p782_p12 }
  0x1f   :  { %p785_p1 = pnand %p784_p0, %p778_p11 }
  0x21   :  { %788 = shalt.err (!%p785_p1)
}
  0x22   :  { %30 = dma.hbm_to_vmem [thread:$0]  %s1030_s1, 1024, %s897_s12, [#allocation3], %s841_s21, %s841_s21, %s842_s22  }
  0x23   :  { %s843_s14 = smov [#allocation6]   ;;  %s844_s16 = smov [#allocation7]  }
  0x24   :  { %s52_s15 = sshll.u32 %s843_s14, 4  ;;  %s66_s17 = sshll.u32 %s844_s16, 4  ;;  %s53_s15 = int_to_ptr.vmem [resolvable:$true] %s52_s15  ;;  %s934_s17 = int_to_ptr.vmem [resolvable:$true] %s66_s17 }
  0x25   :  { %s789_s20 = scalar_lea.hbm %s1034_s5, 1024 }
  0x26   :  { %p790_p2 = scmp.ne.s32.totalorder %s1034_s5, %s789_s20  ;;  %p793_p3 = scmp.lt.u32.totalorder %s789_s20, %s1034_s5 }
  0x28   :  { %p795_p4 = pnand %p793_p3, %p790_p2 }
  0x2a   :  { %798 = shalt.err (!%p795_p4)
}
  0x2b   :  { %s799_s1 = scalar_lea.vmem %s53_s15, 1024  ;;  %p804_p6 = scmp.lt.s32.totalorder %s53_s15, %s53_s15 }
  0x2c   :  { %p800_p5 = scmp.ne.s32.totalorder %s53_s15, %s799_s1  ;;  %p805_p7 = scmp.lt.s32.totalorder %s799_s1, %s799_s1 }
  0x2e   :  { %p806_p8 = por %p805_p7, %p804_p6 }
  0x30   :  { %p807_p9 = pnand %p806_p8, %p800_p5 }
  0x32   :  { %810 = shalt.err (!%p807_p9)
}
  0x33   :  { %58 = dma.hbm_to_vmem [thread:$0]  %s1034_s5, 1024, %s53_s15, [#allocation5], %s841_s21, %s841_s21, %s842_s22  }
  0x34   :  { %s811_s30 = scalar_lea.hbm %s1036_s7, 1024 }
  0x35   :  { %p812_p10 = scmp.ne.s32.totalorder %s1036_s7, %s811_s30  ;;  %p815_p11 = scmp.lt.u32.totalorder %s811_s30, %s1036_s7 }
  0x37   :  { %p817_p12 = pnand %p815_p11, %p812_p10 }
  0x39   :  { %820 = shalt.err (!%p817_p12)
}
  0x3a   :  { %s821_s14 = scalar_lea.vmem %s934_s17, 1024  ;;  %p826_p0 = scmp.lt.s32.totalorder %s934_s17, %s934_s17 }
  0x3b   :  { %p822_p13 = scmp.ne.s32.totalorder %s934_s17, %s821_s14  ;;  %p827_p1 = scmp.lt.s32.totalorder %s821_s14, %s821_s14 }
  0x3d   :  { %p828_p2 = por %p827_p1, %p826_p0 }
  0x3f   :  { %p829_p3 = pnand %p828_p2, %p822_p13 }
  0x41   :  { %832 = shalt.err (!%p829_p3)
}
  0x42   :  { %72 = dma.hbm_to_vmem [thread:$0]  %s1036_s7, 1024, %s934_s17, [#allocation8], %s841_s21, %s841_s21, %s842_s22  }
  0x43   :  { %833 = dma.done.wait [#allocation3], 1024  }
  0x44   :  { %834 = vsyncadd [#allocation3], 4294966272 }
  0x45   :  { %835 = dma.done.wait [#allocation5], 2048  }
  0x46   :  { %836 = vsyncadd [#allocation5], 4294965248 }
  0x47   :  { %837 = dma.done.wait [#allocation8], 1024  }
  0x48   :  { %838 = vsyncadd [#allocation8], 4294966272  ;;  %v845_v0 = vmov 0.0   ;;  %vm846_vm0 = vmmov 0   ;;  %v713_v1 = vld [vmem:[#allocation2] sm:$0xff]   ;;  %v714_v2 = vld [vmem:[#allocation2 + $0x8] sm:$0xff]  }
  0x49   :  { %625 = vmatprep.subr.bf16.mxu0 %v845_v0  ;;  %641 = vmatprep.mubr.msk.bf16.mxu0 %vm846_vm0, %v845_v0  ;;  %v715_v3 = vld [vmem:[#allocation2 + $0x10] sm:$0xff]   ;;  %v721_v4 = vld [vmem:[#allocation4] sm:$0xff]   ;;  %v716_v5 = vld [vmem:[#allocation2 + $0x18] sm:$0xff]  }
  0x4a   :  { %645 = vmatprep.subr.bf16.mxu1 %v845_v0  ;;  %661 = vmatprep.mubr.msk.bf16.mxu1 %vm846_vm0, %v845_v0  ;;  %v722_v6 = vld [vmem:[#allocation4 + $0x8] sm:$0xff]   ;;  %v717_v7 = vld [vmem:[#allocation2 + $0x20] sm:$0xff]   ;;  %v723_v8 = vld [vmem:[#allocation4 + $0x10] sm:$0xff]  }
  0x4b   :  { %626 = vmatpush3.bf16.msra.mxu0 %v713_v1  ;;  %646 = vmatpush3.bf16.msra.mxu1 %v721_v4  ;;  %v718_v9 = vld [vmem:[#allocation2 + $0x28] sm:$0xff]   ;;  %v724_v10 = vld [vmem:[#allocation4 + $0x18] sm:$0xff]   ;;  %v719_v11 = vld [vmem:[#allocation2 + $0x30] sm:$0xff]  }
  0x4c   :  { %627 = vmatprep.subr.bf16.mxu0 %v845_v0  ;;  %647 = vmatprep.subr.bf16.mxu1 %v845_v0  ;;  %v725_v12 = vld [vmem:[#allocation4 + $0x20] sm:$0xff]   ;;  %v720_v13 = vld [vmem:[#allocation2 + $0x38] sm:$0xff]   ;;  %v726_v14 = vld [vmem:[#allocation4 + $0x28] sm:$0xff]  }
  0x4d   :  { %v88_v15 = vld [vmem:[%s1029_s0] sm:$0xf]  ;;  %v727_v16 = vld [vmem:[#allocation4 + $0x30] sm:$0xff]   ;;  %v728_v17 = vld [vmem:[#allocation4 + $0x38] sm:$0xff]  }
  0x4e   :  { %v729_v18 = vld [vmem:[#allocation6] sm:$0xff]   ;;  %v730_v19 = vld [vmem:[#allocation6 + $0x8] sm:$0xff]   ;;  %v731_v20 = vld [vmem:[#allocation6 + $0x10] sm:$0xff]  }
  0x4f   :  { %628 = vmatpush3.bf16.msra.mxu0 %v714_v2  ;;  %648 = vmatpush3.bf16.msra.mxu1 %v722_v6  ;;  %v732_v21 = vld [vmem:[#allocation6 + $0x18] sm:$0xff]   ;;  %v733_v22 = vld [vmem:[#allocation6 + $0x20] sm:$0xff]   ;;  %v734_v23 = vld [vmem:[#allocation6 + $0x28] sm:$0xff]  }
  0x50   :  { %629 = vmatprep.subr.bf16.mxu0 %v845_v0  ;;  %649 = vmatprep.subr.bf16.mxu1 %v845_v0  ;;  %v553_v24 = vld [vmem:[%s1031_s2] ss:$0 sm:$0xff]  ;;  %v735_v33 = vld [vmem:[#allocation6 + $0x30] sm:$0xff]   ;;  %v736_v34 = vld [vmem:[#allocation6 + $0x38] sm:$0xff]  }
  0x51   :  { %v737_v35 = vld [vmem:[#allocation7] sm:$0xff]   ;;  %v738_v36 = vld [vmem:[#allocation7 + $0x8] sm:$0xff]   ;;  %v739_v37 = vld [vmem:[#allocation7 + $0x10] sm:$0xff]  }
  0x52   :  { %v740_v38 = vld [vmem:[#allocation7 + $0x18] sm:$0xff]   ;;  %v741_v39 = vld [vmem:[#allocation7 + $0x20] sm:$0xff]   ;;  %v742_v40 = vld [vmem:[#allocation7 + $0x28] sm:$0xff]  }
  0x53   :  { %630 = vmatpush3.bf16.msra.mxu0 %v715_v3  ;;  %650 = vmatpush3.bf16.msra.mxu1 %v723_v8  ;;  %v562_v41 = vld [vmem:[%s1033_s4] ss:$0 sm:$0xff]  ;;  %v743_v50 = vld [vmem:[#allocation7 + $0x30] sm:$0xff]   ;;  %v744_v51 = vld [vmem:[#allocation7 + $0x38] sm:$0xff]  }
  0x54   :  { %631 = vmatprep.subr.bf16.mxu0 %v845_v0  ;;  %651 = vmatprep.subr.bf16.mxu1 %v845_v0  ;;  %v571_v52 = vld [vmem:[%s1035_s6] ss:$0 sm:$0xff] }
  0x55   :  { %v580_v61 = vld [vmem:[%s1037_s8] ss:$0 sm:$0xff] }
  0x57   :  { %632 = vmatpush3.bf16.msra.mxu0 %v716_v5  ;;  %652 = vmatpush3.bf16.msra.mxu1 %v724_v10 }
  0x58   :  { %633 = vmatprep.subr.bf16.mxu0 %v845_v0  ;;  %653 = vmatprep.subr.bf16.mxu1 %v845_v0 }
  0x5b   :  { %634 = vmatpush3.bf16.msra.mxu0 %v717_v7  ;;  %654 = vmatpush3.bf16.msra.mxu1 %v725_v12 }
  0x5c   :  { %635 = vmatprep.subr.bf16.mxu0 %v845_v0  ;;  %655 = vmatprep.subr.bf16.mxu1 %v845_v0 }
  0x5f   :  { %636 = vmatpush3.bf16.msra.mxu0 %v718_v9  ;;  %656 = vmatpush3.bf16.msra.mxu1 %v726_v14 }
  0x60   :  { %637 = vmatprep.subr.bf16.mxu0 %v845_v0  ;;  %657 = vmatprep.subr.bf16.mxu1 %v845_v0 }
  0x63   :  { %638 = vmatpush3.bf16.msra.mxu0 %v719_v11  ;;  %658 = vmatpush3.bf16.msra.mxu1 %v727_v16 }
  0x64   :  { %639 = vmatprep.subr.bf16.mxu0 %v845_v0  ;;  %659 = vmatprep.subr.bf16.mxu1 %v845_v0 }
  0x67   :  { %640 = vmatpush3.bf16.msra.mxu0 %v720_v13  ;;  %660 = vmatpush3.bf16.msra.mxu1 %v728_v17 }
  0x68   :  { %665 = vmatprep.subr.bf16.mxu0 %v845_v0  ;;  %685 = vmatprep.subr.bf16.mxu1 %v845_v0 }
  0x6a   :  { %642 = vmatmul.mubr.bf16.vlgmr.msra.gmra.mrb[0].mxu0 %v88_v15 }
  0x6b   :  { %681 = vmatprep.mubr.msk.bf16.mxu0 %vm846_vm0, %v845_v0  ;;  %666 = vmatpush3.bf16.msra.mxu0 %v729_v18 }
  0x6c   :  { %667 = vmatprep.subr.bf16.mxu0 %v845_v0 }
  0x6f   :  { %668 = vmatpush3.bf16.msra.mxu0 %v730_v19 }
  0x70   :  { %669 = vmatprep.subr.bf16.mxu0 %v845_v0 }
  0x73   :  { %670 = vmatpush3.bf16.msra.mxu0 %v731_v20 }
  0x74   :  { %671 = vmatprep.subr.bf16.mxu0 %v845_v0 }
  0x77   :  { %672 = vmatpush3.bf16.msra.mxu0 %v732_v21 }
  0x78   :  { %673 = vmatprep.subr.bf16.mxu0 %v845_v0 }
  0x7b   :  { %674 = vmatpush3.bf16.msra.mxu0 %v733_v22 }
  0x7c   :  { %675 = vmatprep.subr.bf16.mxu0 %v845_v0 }
  0x7f   :  { %676 = vmatpush3.bf16.msra.mxu0 %v734_v23 }
  0x80   :  { %677 = vmatprep.subr.bf16.mxu0 %v845_v0 }
  0x83   :  { %678 = vmatpush3.bf16.msra.mxu0 %v735_v33 }
  0x84   :  { %679 = vmatprep.subr.bf16.mxu0 %v845_v0 }
  0x87   :  { %680 = vmatpush3.bf16.msra.mxu0 %v736_v34 }
 0x13d   :  { %v194_v25 = vpop.f32.mrb[0].mxu0 }
 0x13e   :  { %v195_v26 = vadd.f32 %v553_v24, %v194_v25  ;;  %v643_v27 = vpop.f32.mrb[1].mxu0 }
 0x13f   :  { %v197_v28 = vpop.f32.mrb[2].mxu0 }
 0x140   :  { %vm200_vm1 = vcmp.gt.f32.partialorder %v195_v26, 0.0  ;;  %v201_v29 = vmul.f32 0.01, %v195_v26  ;;  %v644_v30 = vpop.f32.mrb[3].mxu0 }
 0x142   :  { %v202_v31 = vsel %vm200_vm1, %v195_v26, %v201_v29 }
 0x143   :  { %v203_v32 = vpack.c.bf16 %v202_v31, %v202_v31 }
 0x145   :  { %662 = vmatmul.mubr.bf16.vlgmr.msra.gmra.mrb[0].mxu1 %v203_v32 }
 0x146   :  { %701 = vmatprep.mubr.msk.bf16.mxu1 %vm846_vm0, %v845_v0  ;;  %686 = vmatpush3.bf16.msra.mxu1 %v737_v35 }
 0x147   :  { %687 = vmatprep.subr.bf16.mxu1 %v845_v0 }
 0x14a   :  { %688 = vmatpush3.bf16.msra.mxu1 %v738_v36 }
 0x14b   :  { %689 = vmatprep.subr.bf16.mxu1 %v845_v0 }
 0x14e   :  { %690 = vmatpush3.bf16.msra.mxu1 %v739_v37 }
 0x14f   :  { %691 = vmatprep.subr.bf16.mxu1 %v845_v0 }
 0x152   :  { %692 = vmatpush3.bf16.msra.mxu1 %v740_v38 }
 0x153   :  { %693 = vmatprep.subr.bf16.mxu1 %v845_v0 }
 0x156   :  { %694 = vmatpush3.bf16.msra.mxu1 %v741_v39 }
 0x157   :  { %695 = vmatprep.subr.bf16.mxu1 %v845_v0 }
 0x15a   :  { %696 = vmatpush3.bf16.msra.mxu1 %v742_v40 }
 0x15b   :  { %697 = vmatprep.subr.bf16.mxu1 %v845_v0 }
 0x15e   :  { %698 = vmatpush3.bf16.msra.mxu1 %v743_v50 }
 0x15f   :  { %699 = vmatprep.subr.bf16.mxu1 %v845_v0 }
 0x162   :  { %700 = vmatpush3.bf16.msra.mxu1 %v744_v51 }
 0x218   :  { %v309_v42 = vpop.f32.mrb[0].mxu1 }
 0x219   :  { %v310_v43 = vadd.f32 %v562_v41, %v309_v42  ;;  %v663_v44 = vpop.f32.mrb[1].mxu1 }
 0x21a   :  { %v312_v45 = vpop.f32.mrb[2].mxu1 }
 0x21b   :  { %vm315_vm2 = vcmp.gt.f32.partialorder %v310_v43, 0.0  ;;  %v316_v46 = vmul.f32 0.01, %v310_v43  ;;  %v664_v47 = vpop.f32.mrb[3].mxu1 }
 0x21d   :  { %v317_v48 = vsel %vm315_vm2, %v310_v43, %v316_v46 }
 0x21e   :  { %v318_v49 = vpack.c.bf16 %v317_v48, %v317_v48 }
 0x220   :  { %682 = vmatmul.mubr.bf16.vlgmr.msra.gmra.mrb[4].mxu0 %v318_v49 }
 0x2f3   :  { %v424_v53 = vpop.f32.mrb[4].mxu0 }
 0x2f4   :  { %v425_v54 = vadd.f32 %v571_v52, %v424_v53  ;;  %v683_v55 = vpop.f32.mrb[5].mxu0 }
 0x2f5   :  { %v427_v56 = vpop.f32.mrb[6].mxu0 }
 0x2f6   :  { %vm430_vm3 = vcmp.gt.f32.partialorder %v425_v54, 0.0  ;;  %v431_v57 = vmul.f32 0.01, %v425_v54  ;;  %v684_v58 = vpop.f32.mrb[7].mxu0 }
 0x2f8   :  { %v432_v59 = vsel %vm430_vm3, %v425_v54, %v431_v57 }
 0x2f9   :  { %v433_v60 = vpack.c.bf16 %v432_v59, %v432_v59 }
 0x2fb   :  { %702 = vmatmul.mubr.bf16.vlgmr.msra.gmra.mrb[4].mxu1 %v433_v60 }
 0x3ce   :  { %v539_v62 = vpop.f32.mrb[4].mxu1 }
 0x3cf   :  { %v540_v63 = vadd.f32 %v580_v61, %v539_v62  ;;  %v703_v0 = vpop.f32.mrb[5].mxu1 }
 0x3d0   :  { %v542_v1 = vpop.f32.mrb[6].mxu1 }
 0x3d1   :  { %545 = vst [vmem:[%s1038_s9] sm:$0xff] %v540_v63  ;;  %v704_v2 = vpop.f32.mrb[7].mxu1 }
 0x3d2   :  { %550 = vsyncpa [#allocation3], 1 }
 0x3d3   :  { %551 = vsyncpa [#allocation5], 1 }
 0x3d4   :  { %552 = vsyncpa [#allocation8], 1 }

</bundles_post_ra>
